<compile_context>
chip_gen: v7x
topology: tpu7x:2x2x1
jax: 0.10.0
libtpu: 0.0.40
codegen_flags: <defaults>
</compile_context>

<pallas_src>
import jax
import jax.numpy as jnp
from jax.experimental import pallas as pl
from jax.experimental.pallas import tpu as pltpu

_LANE = 128
_SUBLANE = 8
_DEFAULT_SCOPED_VMEM = 16 * 1024 * 1024   # v5e's conservative scoped default
_VMEM_LIMIT_CAP = 64 * 1024 * 1024        # v7x physical VMEM per TensorCore


def _round_up(a, m):
    return -(-a // m) * m


def _round_down(a, m):
    return (a // m) * m


def _vmem_tile_bytes(rows, cols, itemsize):
    # VMEM allocations are laid out in (8, 128) tiles; round up so the
    # estimate never undershoots what Mosaic actually reserves.
    return (_round_up(max(rows, 1), _SUBLANE)
            * _round_up(max(cols, 1), _LANE) * itemsize)


def _resident_block_spec(block_shape, index_map):
    """Grid-invariant block: stays resident in VMEM, single-buffered."""
    try:
        return pl.BlockSpec(block_shape, index_map,
                            pipeline_mode=pl.Buffered(1))
    except (TypeError, AttributeError):   # compat: older BlockSpec signature
        return pl.BlockSpec(block_shape, index_map)


def _linear_kernel(x_ref, w_ref, b_ref, o_ref):
    # One batch tile: [Bt, D_in] @ [D_in, D_out_p] + [1, D_out_p], f32 MXU acc.
    acc = jnp.dot(x_ref[...], w_ref[...], preferred_element_type=jnp.float32)
    o_ref[...] = (acc + b_ref[...]).astype(o_ref.dtype)


class WrappedLinear:
    """WrappedModel(nn.Linear).forward: y = x @ weight + bias.

    Parameter padding / casting is done ONCE at construction, not per call.
    """

    def __init__(self, weight, bias, *, batch_tile=256, compute_dtype=None,
                 lane_pad_min=256, pallas_min_out_elems=_LANE * _LANE):
        d_in, d_out = weight.shape
        assert bias.shape == (d_out,)
        self.d_in, self.d_out = d_in, d_out
        self.weight, self.bias = weight, bias            # unpadded (fallback path)
        self.pallas_min_out_elems = pallas_min_out_elems
        # Batch tile: force a multiple of 8 sublanes (avoids Mosaic lowering
        # failures for values like 500).
        self.batch_tile = max(_SUBLANE, _round_down(int(batch_tile), _SUBLANE))

        # Lane padding only for large, 128-misaligned D_out; otherwise the
        # output block's last dim equals the full array dim (valid under the
        # (8,128) rule) and masked stores on the natural width are cheaper
        # than 4x HBM writeback plus a trailing slice copy.
        if d_out >= lane_pad_min and d_out % _LANE != 0:
            self.d_out_p = _round_up(d_out, _LANE)
        else:
            self.d_out_p = d_out

        w_p = weight
        b_p = bias.reshape(1, d_out)
        if self.d_out_p != d_out:
            pad = self.d_out_p - d_out
            w_p = jnp.pad(w_p, ((0, 0), (0, pad)))       # zero cols: math unchanged
            b_p = jnp.pad(b_p, ((0, 0), (0, pad)))
        if compute_dtype is not None:
            # bf16 inputs double MXU throughput on v6e/v7x; bias/accum stay f32.
            w_p = w_p.astype(compute_dtype)
        self.compute_dtype = compute_dtype
        self.w_p = w_p
        self.b_p = b_p

    def __call__(self, x, *, use_pallas=None):
        B, d_in = x.shape
        assert d_in == self.d_in
        if use_pallas is None:
            # Tiny problems are pure launch overhead: let XLA fuse matmul+bias.
            use_pallas = B * self.d_out >= self.pallas_min_out_elems
        if not use_pallas:
            return x @ self.weight + self.bias
        return self._forward_pallas(x)

    def _forward_pallas(self, x):
        B, d_in = x.shape
        out_dtype = x.dtype
        if self.compute_dtype is not None:
            x = x.astype(self.compute_dtype)
        d_out, d_out_p = self.d_out, self.d_out_p

        # ---- batch tiling --------------------------------------------------
        bt = min(self.batch_tile, _round_up(B, _SUBLANE))
        B_p = _round_up(B, _SUBLANE)
        # v7x megacore: prefer >= 2 grid steps when there are enough rows so
        # dimension_semantics=("parallel",) can shard across both TensorCores.
        if B_p // bt < 2 and B_p >= 2 * _SUBLANE:
            bt = _round_up(pl.cdiv(B_p, 2), _SUBLANE)
        B_p = _round_up(B, bt)
        x_p = x if B_p == B else jnp.pad(x, ((0, B_p - B), (0, 0)))
        grid = (B_p // bt,)

        # ---- scheduler hint from LOGICAL (unpadded) shapes ------------------
        itemsize = jnp.dtype(out_dtype).itemsize
        cost = pl.CostEstimate(
            flops=2 * B * d_in * d_out,
            transcendentals=0,
            bytes_accessed=(B * d_in + d_in * d_out + d_out + B * d_out)
            * itemsize,
        )

        # ---- VMEM budget ----------------------------------------------------
        x_isz = jnp.dtype(x_p.dtype).itemsize
        w_isz = jnp.dtype(self.w_p.dtype).itemsize
        b_isz = jnp.dtype(self.b_p.dtype).itemsize
        vmem_est = (
            2 * _vmem_tile_bytes(bt, d_in, x_isz)           # x: double-buffered
            + 2 * _vmem_tile_bytes(bt, d_out_p, itemsize)   # out: double-buffered
            + _vmem_tile_bytes(d_in, d_out_p, w_isz)        # weight: resident, 1 buf
            + _vmem_tile_bytes(1, d_out_p, b_isz)           # bias: resident, 1 buf
        )
        compiler_kwargs = dict(dimension_semantics=("parallel",))
        if vmem_est > _DEFAULT_SCOPED_VMEM:
            # TODO(synk): if the resident weight alone approaches the 64 MiB
            # v7x cap, tile D_in (reduction, "arbitrary", f32 accumulator with
            # pl.when init/finalize) and/or D_out instead of raising the limit.
            compiler_kwargs["vmem_limit_bytes"] = int(
                min(vmem_est * 3 // 2 + (1 << 20), _VMEM_LIMIT_CAP))

        out_p = pl.pallas_call(
            _linear_kernel,
            out_shape=jax.ShapeDtypeStruct((B_p, d_out_p), out_dtype),
            grid=grid,
            in_specs=[
                # x: streamed per batch tile (pipelined by Pallas).
                pl.BlockSpec((bt, d_in), lambda i: (i, 0)),
                # weight / bias: constant index_map -> resident, single-buffered.
                _resident_block_spec((d_in, d_out_p), lambda i: (0, 0)),
                _resident_block_spec((1, d_out_p), lambda i: (0, 0)),
            ],
            out_specs=pl.BlockSpec((bt, d_out_p), lambda i: (i, 0)),
            compiler_params=pltpu.CompilerParams(**compiler_kwargs),
            cost_estimate=cost,
        )(x_p, self.w_p, self.b_p)

        if B_p != B or d_out_p != d_out:
            out_p = out_p[:B, :d_out]
        return out_p


if __name__ == "__main__":
    key = jax.random.PRNGKey(0)
    kx, kw, kb, kx2, kw2, kb2 = jax.random.split(key, 6)

    # --- primary check: small shapes matching the instantiated module -------
    B, D_in, D_out = 8, 32, 32
    x = jax.random.normal(kx, (B, D_in), dtype=jnp.float32)
    weight = jax.random.normal(kw, (D_in, D_out), dtype=jnp.float32) * 0.05
    bias = jax.random.normal(kb, (D_out,), dtype=jnp.float32) * 0.01

    model = WrappedLinear(weight, bias)
    # Force the Pallas path to exercise the kernel (the auto size gate would
    # route a shape this small to the fused-XLA fallback).
    out = jax.block_until_ready(model(x, use_pallas=True))
    ref = x @ weight + bias
    assert out.shape == (B, D_out)
    assert jnp.allclose(out, ref, atol=1e-5, rtol=1e-5)

    # Auto-gated path at the same tiny shape: plain fused XLA, same numerics.
    out_auto = jax.block_until_ready(model(x))
    assert jnp.allclose(out_auto, ref, atol=1e-5, rtol=1e-5)

    # --- secondary check: exercises batch tiling with a >=2-step grid
    #     (megacore) and the lane-padded-output path for misaligned D_out ----
    B2, D_in2, D_out2 = 64, 128, 320
    x2 = jax.random.normal(kx2, (B2, D_in2), dtype=jnp.float32)
    w2 = jax.random.normal(kw2, (D_in2, D_out2), dtype=jnp.float32) * 0.02
    b2 = jax.random.normal(kb2, (D_out2,), dtype=jnp.float32) * 0.01
    model2 = WrappedLinear(w2, b2, batch_tile=256)
    out2 = jax.block_until_ready(model2(x2, use_pallas=True))
    ref2 = x2 @ w2 + b2
    assert out2.shape == (B2, D_out2)
    assert jnp.allclose(out2, ref2, atol=1e-3, rtol=1e-3)

    print("KERNEL_OK")
</pallas_src>

<mosaic_0001>
module attributes {stable_mosaic.version = 11 : i64} {
  func.func @_linear_kernel(%arg0: i32, %arg1: memref<8x32xf32, #tpu.memory_space<vmem>>, %arg2: memref<32x32xf32, #tpu.memory_space<vmem>>, %arg3: memref<1x32xf32, #tpu.memory_space<vmem>>, %arg4: memref<8x32xf32, #tpu.memory_space<vmem>>) attributes {dimension_semantics = [#tpu.dimension_semantics<parallel>], iteration_bounds = array<i64: 1>, scalar_prefetch = 0 : i64, scratch_operands = 0 : i64, tpu.core_type = #tpu.core_type<tc>, window_params = [{transform_indices = @transform_0, window_bounds = array<i64: 8, 32>}, {pipeline_mode = #tpu.pipeline_mode<synchronous>, transform_indices = @transform_1, window_bounds = array<i64: 32, 32>}, {pipeline_mode = #tpu.pipeline_mode<synchronous>, transform_indices = @transform_2, window_bounds = array<i64: 1, 32>}, {transform_indices = @transform_3, window_bounds = array<i64: 8, 32>}]} {
    %c0 = arith.constant 0 : index
    %c0_0 = arith.constant 0 : index
    %0 = vector.load %arg1[%c0, %c0_0] : memref<8x32xf32, #tpu.memory_space<vmem>>, vector<8x32xf32>
    %c0_1 = arith.constant 0 : index
    %c0_2 = arith.constant 0 : index
    %1 = vector.load %arg2[%c0_1, %c0_2] : memref<32x32xf32, #tpu.memory_space<vmem>>, vector<32x32xf32>
    %cst = arith.constant dense<0.000000e+00> : vector<8x32xf32>
    %2 = tpu.matmul %0, %1, %cst {dimension_numbers = #tpu.dot_dimension_numbers<[1], [0], [0], [1], [0, 0, 1, 1], [], []>} : vector<8x32xf32>, vector<32x32xf32>, vector<8x32xf32> -> vector<8x32xf32>
    %c0_3 = arith.constant 0 : index
    %c0_4 = arith.constant 0 : index
    %3 = vector.load %arg3[%c0_3, %c0_4] : memref<1x32xf32, #tpu.memory_space<vmem>>, vector<1x32xf32>
    %4 = vector.broadcast %3 : vector<1x32xf32> to vector<8x32xf32>
    %5 = arith.addf %2, %4 : vector<8x32xf32>
    %c0_5 = arith.constant 0 : index
    %c0_6 = arith.constant 0 : index
    %6 = vector.load %arg4[%c0_5, %c0_6] : memref<8x32xf32, #tpu.memory_space<vmem>>, vector<8x32xf32>
    tpu.vector_store %arg4[%c0_5, %c0_6], %5 {strides = array<i32>} : memref<8x32xf32, #tpu.memory_space<vmem>>, vector<8x32xf32>,
    return
  }
  func.func @transform_0(%arg0: i32) -> (i32, i32) {
    %c0_i32 = arith.constant 0 : i32
    %c0_i32_0 = arith.constant 0 : i32
    return %arg0, %c0_i32 : i32, i32
  }
  func.func @transform_1(%arg0: i32) -> (i32, i32) {
    %c0_i32 = arith.constant 0 : i32
    %c0_i32_0 = arith.constant 0 : i32
    %c0_i32_1 = arith.constant 0 : i32
    return %c0_i32, %c0_i32_0 : i32, i32
  }
  func.func @transform_2(%arg0: i32) -> (i32, i32) {
    %c0_i32 = arith.constant 0 : i32
    %c0_i32_0 = arith.constant 0 : i32
    %c0_i32_1 = arith.constant 0 : i32
    return %c0_i32, %c0_i32_0 : i32, i32
  }
  func.func @transform_3(%arg0: i32) -> (i32, i32) {
    %c0_i32 = arith.constant 0 : i32
    %c0_i32_0 = arith.constant 0 : i32
    return %arg0, %c0_i32 : i32, i32
  }
}

</mosaic_0001>

<bundles_post_ra>
// kernel: tpu_custom_call.1
= control target key start
LH: loop header
LB: loop body
LE: loop exit
PB: predicated region body
PF: predicated region fallthrough
CT: control target
= control target key end

     0   :  { %8 = vsyncpa [#allocation3], 0  ;;  %s322_s0 = inlined_call_operand.hbm [shape: f32[8,32], index: 0, kind: input, shape index: {}]   ;;  %s323_s1 = inlined_call_operand.hbm [shape: f32[32,32], index: 1, kind: input, shape index: {}]   ;;  %s324_s2 = inlined_call_operand.vmem [shape: f32[1,32], index: 2, kind: input, shape index: {}]   ;;  %s325_s3 = inlined_call_operand.hbm [shape: f32[8,32], index: 3, kind: output, shape index: {}]  }
   0x1   :  { %9 = vsyncpa [#allocation6], 0 }
   0x2   :  { %10 = vsyncpa [#allocation4], 0  ;;  %s248_s12 = smov [#allocation2]   ;;  %s249_s14 = smov [#allocation5]  }
   0x3   :  { %s17_s13 = sshll.u32 %s248_s12, 4  ;;  %s26_s15 = sshll.u32 %s249_s14, 4  ;;  %s18_s13 = int_to_ptr.vmem [resolvable:$true] %s17_s13  ;;  %s276_s15 = int_to_ptr.vmem [resolvable:$true] %s26_s15 }
   0x4   :  { %s176_s18 = scalar_lea.hbm %s322_s0, 128 }
   0x5   :  { %p177_p0 = scmp.ne.s32.totalorder %s322_s0, %s176_s18  ;;  %p180_p1 = scmp.lt.u32.totalorder %s176_s18, %s322_s0 }
   0x7   :  { %p182_p2 = pnand %p180_p1, %p177_p0 }
   0x9   :  { %185 = shalt.err (!%p182_p2)
}
   0xa   :  { %s186_s23 = scalar_lea.vmem %s18_s13, 128  ;;  %p191_p4 = scmp.lt.s32.totalorder %s18_s13, %s18_s13 }
   0xb   :  { %p187_p3 = scmp.ne.s32.totalorder %s18_s13, %s186_s23  ;;  %p192_p5 = scmp.lt.s32.totalorder %s186_s23, %s186_s23 }
   0xd   :  { %p193_p6 = por %p192_p5, %p191_p4 }
   0xf   :  { %p194_p7 = pnand %p193_p6, %p187_p3 }
  0x11   :  { %197 = shalt.err (!%p194_p7)
}
  0x12   :  { %20 = dma.hbm_to_vmem [thread:$0]  %s322_s0, 128, %s18_s13, [#allocation3]  }
  0x13   :  { %s198_s28 = scalar_lea.hbm %s323_s1, 512 }
  0x14   :  { %p199_p8 = scmp.ne.s32.totalorder %s323_s1, %s198_s28  ;;  %p202_p9 = scmp.lt.u32.totalorder %s198_s28, %s323_s1 }
  0x16   :  { %p204_p10 = pnand %p202_p9, %p199_p8 }
  0x18   :  { %207 = shalt.err (!%p204_p10)
}
  0x19   :  { %s208_s6 = scalar_lea.vmem %s276_s15, 512  ;;  %p213_p12 = scmp.lt.s32.totalorder %s276_s15, %s276_s15 }
  0x1a   :  { %p209_p11 = scmp.ne.s32.totalorder %s276_s15, %s208_s6  ;;  %p214_p13 = scmp.lt.s32.totalorder %s208_s6, %s208_s6 }
  0x1c   :  { %p215_p0 = por %p214_p13, %p213_p12 }
  0x1e   :  { %p216_p1 = pnand %p215_p0, %p209_p11 }
  0x20   :  { %219 = shalt.err (!%p216_p1)
}
  0x21   :  { %s250_s0 = smov 128   ;;  %s251_s7 = smov 8  }
  0x22   :  { %32 = dma.hbm_to_vmem [thread:$0]  %s323_s1, 512, %s276_s15, [#allocation6], %s250_s0, %s250_s0, %s251_s7  }
  0x23   :  { %242 = dma.done.wait [#allocation3], 128  }
  0x24   :  { %243 = vsyncadd [#allocation3], 4294967168 }
  0x25   :  { %244 = dma.done.wait [#allocation6], 512  }
  0x26   :  { %245 = vsyncadd [#allocation6], 4294966784  ;;  %v252_v0 = vmov 0.0|0.0   ;;  %vm253_vm0 = vmmov 0   ;;  %v254_v1 = vmov 0.0   ;;  %v42_v2 = vld [vmem:[#allocation5] sm:$0xff] }
  0x27   :  { %162 = vmatprep.subr.bf16.mxu0 %v252_v0  ;;  %159 = vmatprep.mubr.msk.f32.mxu0 %vm253_vm0, %v254_v1  ;;  %v43_v3 = vld [vmem:[#allocation5 + $0x8] sm:$0xff]  ;;  %v44_v4 = vld [vmem:[#allocation5 + $0x10] sm:$0xff]  ;;  %v45_v6 = vld [vmem:[#allocation5 + $0x18] sm:$0xff]  ;;  %vm53_vm1 = vcmask 261120   ;;  %s255_s11 = smov [#allocation7]  }
  0x28   :  { %v163_v5 = vpack.c.bf16 %v43_v3, %v42_v2  ;;  %v166_v7 = vpack.c.bf16 %v45_v6, %v44_v4  ;;  %v41_v8 = vld [vmem:[#allocation2] sm:$0xff]  ;;  %s134_s12 = sshll.u32 %s255_s11, 4  ;;  %s135_s12 = int_to_ptr.vmem [resolvable:$true] %s134_s12 }
  0x29   :  { %v144_v9 = vld [vmem:[%s324_s2] ss:$0 sm:$0xff]  ;;  %s220_s13 = scalar_lea.vmem %s135_s12, 128  ;;  %p225_p3 = scmp.lt.s32.totalorder %s135_s12, %s135_s12 }
  0x2a   :  { %164 = vmatpush3.bf16.msra.mxu0 %v163_v5  ;;  %p221_p2 = scmp.ne.s32.totalorder %s135_s12, %s220_s13  ;;  %p226_p4 = scmp.lt.s32.totalorder %s220_s13, %s220_s13 }
  0x2b   :  { %165 = vmatprep.subr.bf16.mxu0 %v252_v0 }
  0x2c   :  { %p227_p5 = por %p226_p4, %p225_p3 }
  0x2e   :  { %167 = vmatpush3.bf16.msra.mxu0 %v166_v7  ;;  %p228_p6 = pnand %p227_p5, %p221_p2 }
  0x31   :  { %160 = vmatmul.mubr.msk.f32.vlgmr.msra.gmra.mrb[0].mxu0 %vm53_vm1, %v41_v8 }
 0x104   :  { %v123_v10 = vpop.f32.mrb[0].mxu0 }
 0x105   :  { %v124_v11 = vadd.f32 %v144_v9, %v123_v10  ;;  %v161_v12 = vpop.f32.mrb[1].mxu0 }
 0x107   :  { %127 = vst.msk [vmem:[#allocation7] sm:$0xff] %vm53_vm1, %v124_v11 }
 0x108   :  { %231 = shalt.err (!%p228_p6)
}
 0x109   :  { %s232_s16 = scalar_lea.hbm %s325_s3, 128 }
 0x10a   :  { %p233_p7 = scmp.ne.s32.totalorder %s325_s3, %s232_s16  ;;  %p236_p8 = scmp.lt.u32.totalorder %s232_s16, %s325_s3 }
 0x10c   :  { %p238_p9 = pnand %p236_p8, %p233_p7 }
 0x10e   :  { %241 = shalt.err (!%p238_p9)
}
 0x10f   :  { %137 = dma.vmem_to_hbm [thread:$0]  %s135_s12, 128, %s325_s3, [#allocation4]  }
 0x110   :  { %246 = dma.done.wait [#allocation4], 128  }
 0x111   :  { %247 = vsyncadd [#allocation4], 4294967168 }
 0x112   :  { %141 = vsyncpa [#allocation3], 1 }
 0x113   :  { %142 = vsyncpa [#allocation6], 1 }
 0x114   :  { %143 = vsyncpa [#allocation4], 1 }

</bundles_post_ra>
